<compile_context>
chip_gen: v6e
topology: v6e:2x2x1
jax: 0.10.0
libtpu: 0.0.40
codegen_flags: <defaults>
</compile_context>

<pallas_src>
import functools

import jax
import jax.numpy as jnp
from jax.experimental import pallas as pl
from jax.experimental.pallas import tpu as pltpu


def _tile(n, pref):
    """Largest tile <= pref that divides n (falls back to the full dim)."""
    if n <= pref:
        return n
    t = pref
    while t >= 8:
        if n % t == 0:
            return t
        t //= 2
    return n


# ---------------------------------------------------------------------------
# RMSNorm
# ---------------------------------------------------------------------------
def rmsnorm_kernel(x_ref, w_ref, o_ref, *, eps):
    x = x_ref[...].astype(jnp.float32)
    inv = jax.lax.rsqrt(jnp.mean(x * x, axis=-1, keepdims=True) + eps)
    o_ref[...] = (x * inv * w_ref[...]).astype(o_ref.dtype)


def rmsnorm(x2d, w, eps=1e-5, t_tile=256):
    T, D = x2d.shape
    tT = _tile(T, t_tile)
    return pl.pallas_call(
        functools.partial(rmsnorm_kernel, eps=eps),
        out_shape=jax.ShapeDtypeStruct((T, D), x2d.dtype),
        grid=(T // tT,),
        in_specs=[pl.BlockSpec((tT, D), lambda t: (t, 0)),
                  pl.BlockSpec((1, D), lambda t: (0, 0))],
        out_specs=pl.BlockSpec((tT, D), lambda t: (t, 0)),
        compiler_params=pltpu.CompilerParams(
            dimension_semantics=("parallel",)),
    )(x2d, w.reshape(1, D))


# ---------------------------------------------------------------------------
# Fused RMSNorm + linear: y = rmsnorm(x) @ W.T   (W is nn.Linear (out, in))
# ---------------------------------------------------------------------------
def rmsnorm_linear_kernel(x_ref, g_ref, w_ref, o_ref, *, eps):
    x = x_ref[...].astype(jnp.float32)                       # (tT, Din)
    inv = jax.lax.rsqrt(jnp.mean(x * x, axis=-1, keepdims=True) + eps)
    xn = x * inv * g_ref[...]
    o_ref[...] = jax.lax.dot_general(
        xn, w_ref[...], (((1,), (1,)), ((), ())),
        preferred_element_type=jnp.float32).astype(o_ref.dtype)


def rmsnorm_linear(x2d, gamma, w, eps=1e-5, t_tile=256, n_tile=256):
    T, Din = x2d.shape
    N, _ = w.shape
    tT = _tile(T, t_tile)
    tN = _tile(N, n_tile)
    return pl.pallas_call(
        functools.partial(rmsnorm_linear_kernel, eps=eps),
        out_shape=jax.ShapeDtypeStruct((T, N), x2d.dtype),
        grid=(T // tT, N // tN),
        in_specs=[pl.BlockSpec((tT, Din), lambda t, n: (t, 0)),
                  pl.BlockSpec((1, Din), lambda t, n: (0, 0)),
                  pl.BlockSpec((tN, Din), lambda t, n: (n, 0))],
        out_specs=pl.BlockSpec((tT, tN), lambda t, n: (t, n)),
        compiler_params=pltpu.CompilerParams(
            dimension_semantics=("parallel", "parallel")),
    )(x2d, gamma.reshape(1, Din), w)


# ---------------------------------------------------------------------------
# Linear projection: y = x @ W.T  (W is PyTorch nn.Linear layout: (out, in))
# ---------------------------------------------------------------------------
def linear_kernel(x_ref, w_ref, o_ref):
    o_ref[...] = jax.lax.dot_general(
        x_ref[...], w_ref[...], (((1,), (1,)), ((), ())),
        preferred_element_type=jnp.float32).astype(o_ref.dtype)


def linear(x2d, w, t_tile=256, n_tile=256):
    T, Din = x2d.shape
    N, _ = w.shape
    tT = _tile(T, t_tile)
    tN = _tile(N, n_tile)
    return pl.pallas_call(
        linear_kernel,
        out_shape=jax.ShapeDtypeStruct((T, N), x2d.dtype),
        grid=(T // tT, N // tN),
        in_specs=[pl.BlockSpec((tT, Din), lambda t, n: (t, 0)),
                  pl.BlockSpec((tN, Din), lambda t, n: (n, 0))],
        out_specs=pl.BlockSpec((tT, tN), lambda t, n: (t, n)),
        compiler_params=pltpu.CompilerParams(
            dimension_semantics=("parallel", "parallel")),
    )(x2d, w)


# ---------------------------------------------------------------------------
# Attention core: per (batch, head) softmax(q k^T * scale + bias) @ v
# TODO(synk): switch to an online-softmax (flash) formulation with a KV-tile
# grid axis when S is too large for the full (S, S) score tile in VMEM.
# ---------------------------------------------------------------------------
def attn_kernel(q_ref, k_ref, v_ref, b_ref, o_ref, *, scale):
    q = q_ref[...].astype(jnp.float32)          # (S, hd)
    k = k_ref[...].astype(jnp.float32)          # (S, hd)
    v = v_ref[...].astype(jnp.float32)          # (S, hd)
    s = jax.lax.dot_general(q, k, (((1,), (1,)), ((), ())),
                            preferred_element_type=jnp.float32) * scale
    s = s + b_ref[...]                          # additive mask bias
    p = jax.nn.softmax(s, axis=-1)
    o = jnp.dot(p, v, preferred_element_type=jnp.float32)
    o_ref[...] = o.astype(o_ref.dtype)


def attention_core(q, k, v, bias):
    B, H, S, hd = q.shape
    scale = 1.0 / (hd ** 0.5)

    def qspec():
        return pl.BlockSpec((None, None, S, hd), lambda b, h: (b, h, 0, 0))

    return pl.pallas_call(
        functools.partial(attn_kernel, scale=scale),
        out_shape=jax.ShapeDtypeStruct((B, H, S, hd), q.dtype),
        grid=(B, H),
        in_specs=[qspec(), qspec(), qspec(),
                  pl.BlockSpec((S, S), lambda b, h: (0, 0))],
        out_specs=qspec(),
        compiler_params=pltpu.CompilerParams(
            dimension_semantics=("parallel", "parallel")),
    )(q, k, v, bias)


# ---------------------------------------------------------------------------
# MoE FFN (Mixtral ConditionalFeedForward + routing combine)
# ---------------------------------------------------------------------------
def moe_ffn_kernel(cnt_ref, x_ref, w1_ref, w3_ref, w2_ref, wts_ref, o_ref):
    e = pl.program_id(1)
    i = pl.program_id(2)

    @pl.when((e == 0) & (i == 0))
    def _init():
        o_ref[...] = jnp.zeros_like(o_ref)

    # Skip experts that received no tokens (their routing weights are all 0).
    @pl.when(cnt_ref[e] > 0)
    def _compute():
        # bf16 MXU operands, f32 accumulation.
        x = x_ref[...].astype(jnp.bfloat16)      # (tT, D)
        w1 = w1_ref[...].astype(jnp.bfloat16)    # (tI, D)
        w3 = w3_ref[...].astype(jnp.bfloat16)    # (tI, D)
        w2 = w2_ref[...].astype(jnp.bfloat16)    # (D, tI)

        h1 = jax.lax.dot_general(x, w1, (((1,), (1,)), ((), ())),
                                 preferred_element_type=jnp.float32)
        h3 = jax.lax.dot_general(x, w3, (((1,), (1,)), ((), ())),
                                 preferred_element_type=jnp.float32)
        h = (h1 * jax.nn.sigmoid(h1)) * h3       # silu(h1)*h3, f32 (tT, tI)

        out_e = jax.lax.dot_general(h.astype(jnp.bfloat16), w2,
                                    (((1,), (1,)), ((), ())),
                                    preferred_element_type=jnp.float32)
        # per-token routing weight for this expert: (tT, 1) broadcast over D
        o_ref[...] += wts_ref[...] * out_e


def moe_feed_forward(x2d, gate_w, w1, w2, w3, num_activated_experts,
                     t_tile=256, i_tile=512):
    T, D = x2d.shape
    E, I, _ = w1.shape
    A = num_activated_experts
    tT = _tile(T, t_tile)
    tI = _tile(I, i_tile)

    # --- gate + top-k routing: tiny (T, E) work, kept in plain JAX ---
    x2d = x2d.astype(jnp.float32)
    scores = jnp.dot(x2d, gate_w.T.astype(jnp.float32))
    probs = jax.nn.softmax(scores, axis=-1)
    top_w, top_i = jax.lax.top_k(probs, A)                       # (T, A)
    top_w = top_w / jnp.sum(top_w, axis=-1, keepdims=True)
    one_hot = jax.nn.one_hot(top_i, E, dtype=jnp.float32)        # (T, A, E)
    wts_t = jnp.einsum('tae,ta->et', one_hot, top_w)[..., None]  # (E, T, 1)
    counts = jnp.sum(one_hot, axis=(0, 1)).astype(jnp.int32)     # (E,)

    # TODO(synk): replace the dense expert loop with a sorted/grouped top-k
    # matmul (scalar-prefetched group offsets driving the x index_map) to
    # remove the E/A-times redundant MXU work at large T.
    out = pl.pallas_call(
        moe_ffn_kernel,
        out_shape=jax.ShapeDtypeStruct((T, D), jnp.float32),
        grid_spec=pltpu.PrefetchScalarGridSpec(
            num_scalar_prefetch=1,
            grid=(T // tT, E, I // tI),
            in_specs=[
                pl.BlockSpec((tT, D), lambda t, e, i, cnt: (t, 0)),           # x
                pl.BlockSpec((None, tI, D), lambda t, e, i, cnt: (e, i, 0)),  # w1[e]
                pl.BlockSpec((None, tI, D), lambda t, e, i, cnt: (e, i, 0)),  # w3[e]
                pl.BlockSpec((None, D, tI), lambda t, e, i, cnt: (e, 0, i)),  # w2[e]
                pl.BlockSpec((None, tT, 1), lambda t, e, i, cnt: (e, t, 0)),  # wts
            ],
            out_specs=pl.BlockSpec((tT, D), lambda t, e, i, cnt: (t, 0)),
        ),
        compiler_params=pltpu.CompilerParams(
            dimension_semantics=("parallel", "arbitrary", "arbitrary")),
    )(counts, x2d, w1, w3, w2, wts_t)
    return out


# ---------------------------------------------------------------------------
# RoPE (elementwise glue, identical to the PyTorch apply_rotary_emb)
# ---------------------------------------------------------------------------
def apply_rotary_emb(x, freqs_cis):
    # x: (B, S, H, hd); freqs_cis: (S, hd//2, 2)
    xs = x.astype(jnp.float32).reshape(*x.shape[:-1], -1, 2)
    fc = freqs_cis.reshape(1, xs.shape[1], 1, xs.shape[3], 2)
    xr, xi = xs[..., 0], xs[..., 1]
    fr, fi = fc[..., 0], fc[..., 1]
    out = jnp.stack([xr * fr - xi * fi, xi * fr + xr * fi], axis=-1)
    return out.reshape(x.shape).astype(x.dtype)


# ---------------------------------------------------------------------------
# Full TransformerBlock forward
# ---------------------------------------------------------------------------
def transformer_block(x, params, cfg, freqs_cis, mask):
    B, S, D = x.shape
    nh, nlh, hd = cfg['n_head'], cfg['n_local_heads'], cfg['head_dim']
    eps = cfg['norm_eps']

    # ---- attention branch (attention_norm fused into the qkv projection) ----
    qkv = rmsnorm_linear(x.reshape(-1, D), params['attention_norm'],
                         params['wqkv'], eps).reshape(B, S, -1)
    kv_size = nlh * hd
    q, k, v = jnp.split(qkv, [D, D + kv_size], axis=-1)
    q = apply_rotary_emb(q.reshape(B, S, nh, hd), freqs_cis)
    k = apply_rotary_emb(k.reshape(B, S, nlh, hd), freqs_cis)
    v = v.reshape(B, S, nlh, hd)
    q, k, v = (jnp.swapaxes(a, 1, 2) for a in (q, k, v))     # (B, H, S, hd)
    rep = nh // nlh
    k = jnp.repeat(k, rep, axis=1)
    v = jnp.repeat(v, rep, axis=1)
    bias = jnp.where(mask, 0.0, -1e30).astype(jnp.float32)   # (S, S) additive
    y = attention_core(q, k, v, bias)                         # (B, nh, S, hd)
    y = jnp.swapaxes(y, 1, 2).reshape(B, S, D)
    y = linear(y.reshape(-1, D), params['wo']).reshape(B, S, D)
    h = x + y

    # ---- MoE FFN branch ----
    hn = rmsnorm(h.reshape(-1, D), params['ffn_norm'], eps)
    moe = moe_feed_forward(hn, params['gate'], params['w1'], params['w2'],
                           params['w3'], cfg['num_activated_experts'])
    return h + moe.reshape(B, S, D).astype(x.dtype)


# ---------------------------------------------------------------------------
# Pure-JAX reference (mirrors the PyTorch forward exactly, all f32)
# ---------------------------------------------------------------------------
def _rms_ref(x, w, eps):
    return x * jax.lax.rsqrt(jnp.mean(x * x, axis=-1, keepdims=True) + eps) * w


def transformer_block_ref(x, params, cfg, freqs_cis, mask):
    B, S, D = x.shape
    nh, nlh, hd = cfg['n_head'], cfg['n_local_heads'], cfg['head_dim']
    eps = cfg['norm_eps']
    xn = _rms_ref(x, params['attention_norm'], eps)
    qkv = xn @ params['wqkv'].T
    kv_size = nlh * hd
    q, k, v = jnp.split(qkv, [D, D + kv_size], axis=-1)
    q = apply_rotary_emb(q.reshape(B, S, nh, hd), freqs_cis)
    k = apply_rotary_emb(k.reshape(B, S, nlh, hd), freqs_cis)
    v = v.reshape(B, S, nlh, hd)
    q, k, v = (jnp.swapaxes(a, 1, 2) for a in (q, k, v))
    rep = nh // nlh
    k = jnp.repeat(k, rep, axis=1)
    v = jnp.repeat(v, rep, axis=1)
    s = jnp.einsum('bhqd,bhkd->bhqk', q, k) / (hd ** 0.5)
    s = jnp.where(mask, s, -jnp.inf)
    p = jax.nn.softmax(s, axis=-1)
    y = jnp.einsum('bhqk,bhkd->bhqd', p, v)
    y = jnp.swapaxes(y, 1, 2).reshape(B, S, D) @ params['wo'].T
    h = x + y

    hn = _rms_ref(h, params['ffn_norm'], eps)
    x2 = hn.reshape(-1, D)
    scores = x2 @ params['gate'].T
    ew = jax.nn.softmax(scores, axis=-1)
    ew, ei = jax.lax.top_k(ew, cfg['num_activated_experts'])
    ew = ew / jnp.sum(ew, axis=-1, keepdims=True)
    w1w = params['w1'][ei]; w3w = params['w3'][ei]; w2w = params['w2'][ei]
    x1 = jax.nn.silu(jnp.einsum('ti,taoi->tao', x2, w1w))
    x3 = jnp.einsum('ti,taoi->tao', x2, w3w)
    eo = jnp.einsum('tao,taio->tai', x1 * x3, w2w)
    moe = jnp.einsum('tai,ta->ti', eo, ew)
    return h + moe.reshape(B, S, D)


# ---------------------------------------------------------------------------
if __name__ == "__main__":
    batch, seq = 2, 8
    dim = 32
    n_head = 4
    n_local_heads = 2
    head_dim = dim // n_head          # 8
    intermediate_size = 64
    num_experts = 8
    num_activated_experts = 2
    rope_base = 10000.0
    cfg = dict(n_head=n_head, n_local_heads=n_local_heads, head_dim=head_dim,
               norm_eps=1e-5, num_activated_experts=num_activated_experts)

    key = jax.random.PRNGKey(0)
    keys = jax.random.split(key, 9)
    total_head_dim = (n_head + 2 * n_local_heads) * head_dim

    x = jax.random.normal(keys[0], (batch, seq, dim), dtype=jnp.float32)
    params = dict(
        attention_norm=1.0 + 0.1 * jax.random.normal(keys[1], (dim,), jnp.float32),
        ffn_norm=1.0 + 0.1 * jax.random.normal(keys[2], (dim,), jnp.float32),
        wqkv=0.1 * jax.random.normal(keys[3], (total_head_dim, dim), jnp.float32),
        wo=0.1 * jax.random.normal(keys[4], (dim, dim), jnp.float32),
        gate=0.1 * jax.random.normal(keys[5], (num_experts, dim), jnp.float32),
        w1=0.1 * jax.random.normal(keys[6], (num_experts, intermediate_size, dim),
                                   jnp.float32),
        w2=0.1 * jax.random.normal(keys[7], (num_experts, dim, intermediate_size),
                                   jnp.float32),
        w3=0.1 * jax.random.normal(keys[8], (num_experts, intermediate_size, dim),
                                   jnp.float32),
    )

    # rotary table (same construction as gpt-fast precompute_freqs_cis)
    inv_freq = 1.0 / (rope_base ** (jnp.arange(0, head_dim, 2, dtype=jnp.float32)
                                    / head_dim))
    ang = jnp.outer(jnp.arange(seq, dtype=jnp.float32), inv_freq)  # (S, hd/2)
    freqs_cis = jnp.stack([jnp.cos(ang), jnp.sin(ang)], axis=-1)   # (S, hd/2, 2)

    mask = jnp.tril(jnp.ones((seq, seq), dtype=bool))              # causal

    fwd = jax.jit(lambda x_, p_, f_, m_: transformer_block(x_, p_, cfg, f_, m_))
    out = fwd(x, params, freqs_cis, mask)
    out = jax.block_until_ready(out)

    ref = transformer_block_ref(x, params, cfg, freqs_cis, mask)
    assert out.shape == (batch, seq, dim)
    err = jnp.max(jnp.abs(out - ref))
    # bf16 MXU operands in the MoE kernel -> looser tolerance than pure f32
    assert jnp.allclose(out, ref, atol=5e-2, rtol=5e-2), f"max err {err}"

    print("KERNEL_OK")
</pallas_src>

<mosaic_0001>
module attributes {stable_mosaic.version = 11 : i64} {
  func.func @rmsnorm_linear_kernel(%arg0: i32, %arg1: i32, %arg2: memref<16x32xf32, #tpu.memory_space<vmem>>, %arg3: memref<1x32xf32, #tpu.memory_space<vmem>>, %arg4: memref<64x32xf32, #tpu.memory_space<vmem>>, %arg5: memref<16x64xf32, #tpu.memory_space<vmem>>) attributes {dimension_semantics = [#tpu.dimension_semantics<parallel>, #tpu.dimension_semantics<parallel>], iteration_bounds = array<i64: 1, 1>, scalar_prefetch = 0 : i64, scratch_operands = 0 : i64, tpu.core_type = #tpu.core_type<tc>, window_params = [{transform_indices = @transform_0, window_bounds = array<i64: 16, 32>}, {pipeline_mode = #tpu.pipeline_mode<synchronous>, transform_indices = @transform_1, window_bounds = array<i64: 1, 32>}, {transform_indices = @transform_2, window_bounds = array<i64: 64, 32>}, {transform_indices = @transform_3, window_bounds = array<i64: 16, 64>}]} {
    %c0 = arith.constant 0 : index
    %c0_0 = arith.constant 0 : index
    %0 = vector.load %arg2[%c0, %c0_0] : memref<16x32xf32, #tpu.memory_space<vmem>>, vector<16x32xf32>
    %1 = arith.mulf %0, %0 : vector<16x32xf32>
    %cst = arith.constant dense<0.000000e+00> : vector<16xf32>
    %2 = vector.multi_reduction <add>, %1, %cst [1] : vector<16x32xf32> to vector<16xf32>
    %3 = vector.shape_cast %2 : vector<16xf32> to vector<16x1xf32>
    %cst_1 = arith.constant 3.200000e+01 : f32
    %4 = vector.broadcast %cst_1 : f32 to vector<16x1xf32>
    %5 = arith.divf %3, %4 : vector<16x1xf32>
    %cst_2 = arith.constant 9.99999974E-6 : f32
    %6 = vector.broadcast %cst_2 : f32 to vector<16x1xf32>
    %7 = arith.addf %5, %6 : vector<16x1xf32>
    %8 = math.rsqrt %7 : vector<16x1xf32>
    %9 = vector.broadcast %8 : vector<16x1xf32> to vector<16x32xf32>
    %10 = arith.mulf %0, %9 : vector<16x32xf32>
    %c0_3 = arith.constant 0 : index
    %c0_4 = arith.constant 0 : index
    %11 = vector.load %arg3[%c0_3, %c0_4] : memref<1x32xf32, #tpu.memory_space<vmem>>, vector<1x32xf32>
    %12 = vector.broadcast %11 : vector<1x32xf32> to vector<16x32xf32>
    %13 = arith.mulf %10, %12 : vector<16x32xf32>
    %c0_5 = arith.constant 0 : index
    %c0_6 = arith.constant 0 : index
    %14 = vector.load %arg4[%c0_5, %c0_6] : memref<64x32xf32, #tpu.memory_space<vmem>>, vector<64x32xf32>
    %cst_7 = arith.constant dense<0.000000e+00> : vector<16x64xf32>
    %15 = tpu.matmul %13, %14, %cst_7 {dimension_numbers = #tpu.dot_dimension_numbers<[1], [1], [0], [0], [0, 0, 1, 0], [], []>} : vector<16x32xf32>, vector<64x32xf32>, vector<16x64xf32> -> vector<16x64xf32>
    %c0_8 = arith.constant 0 : index
    %c0_9 = arith.constant 0 : index
    %16 = vector.load %arg5[%c0_8, %c0_9] : memref<16x64xf32, #tpu.memory_space<vmem>>, vector<16x64xf32>
    tpu.vector_store %arg5[%c0_8, %c0_9], %15 {strides = array<i32>} : memref<16x64xf32, #tpu.memory_space<vmem>>, vector<16x64xf32>,
    return
  }
  func.func @transform_0(%arg0: i32, %arg1: i32) -> (i32, i32) {
    %c0_i32 = arith.constant 0 : i32
    %c0_i32_0 = arith.constant 0 : i32
    return %arg0, %c0_i32 : i32, i32
  }
  func.func @transform_1(%arg0: i32, %arg1: i32) -> (i32, i32) {
    %c0_i32 = arith.constant 0 : i32
    %c0_i32_0 = arith.constant 0 : i32
    %c0_i32_1 = arith.constant 0 : i32
    return %c0_i32, %c0_i32_0 : i32, i32
  }
  func.func @transform_2(%arg0: i32, %arg1: i32) -> (i32, i32) {
    %c0_i32 = arith.constant 0 : i32
    %c0_i32_0 = arith.constant 0 : i32
    return %arg1, %c0_i32 : i32, i32
  }
  func.func @transform_3(%arg0: i32, %arg1: i32) -> (i32, i32) {
    %c0_i32 = arith.constant 0 : i32
    return %arg0, %arg1 : i32, i32
  }
}

module attributes {stable_mosaic.version = 11 : i64} {
  func.func @attn_kernel(%arg0: i32, %arg1: i32, %arg2: memref<1x1x8x8xf32, #tpu.memory_space<vmem>>, %arg3: memref<1x1x8x8xf32, #tpu.memory_space<vmem>>, %arg4: memref<1x1x8x8xf32, #tpu.memory_space<vmem>>, %arg5: memref<8x8xf32, #tpu.memory_space<vmem>>, %arg6: memref<1x1x8x8xf32, #tpu.memory_space<vmem>>) attributes {dimension_semantics = [#tpu.dimension_semantics<parallel>, #tpu.dimension_semantics<parallel>], iteration_bounds = array<i64: 2, 4>, scalar_prefetch = 0 : i64, scratch_operands = 0 : i64, tpu.core_type = #tpu.core_type<tc>, window_params = [{transform_indices = @transform_0, window_bounds = array<i64: 1, 1, 8, 8>}, {transform_indices = @transform_1, window_bounds = array<i64: 1, 1, 8, 8>}, {transform_indices = @transform_2, window_bounds = array<i64: 1, 1, 8, 8>}, {pipeline_mode = #tpu.pipeline_mode<synchronous>, transform_indices = @transform_3, window_bounds = array<i64: 8, 8>}, {transform_indices = @transform_4, window_bounds = array<i64: 1, 1, 8, 8>}]} {
    %c0 = arith.constant 0 : index
    %c0_0 = arith.constant 0 : index
    %c0_1 = arith.constant 0 : index
    %c0_2 = arith.constant 0 : index
    %0 = vector.load %arg2[%c0, %c0_0, %c0_1, %c0_2] : memref<1x1x8x8xf32, #tpu.memory_space<vmem>>, vector<1x1x8x8xf32>
    %1 = vector.shape_cast %0 : vector<1x1x8x8xf32> to vector<8x8xf32>
    %c0_3 = arith.constant 0 : index
    %c0_4 = arith.constant 0 : index
    %c0_5 = arith.constant 0 : index
    %c0_6 = arith.constant 0 : index
    %2 = vector.load %arg3[%c0_3, %c0_4, %c0_5, %c0_6] : memref<1x1x8x8xf32, #tpu.memory_space<vmem>>, vector<1x1x8x8xf32>
    %3 = vector.shape_cast %2 : vector<1x1x8x8xf32> to vector<8x8xf32>
    %c0_7 = arith.constant 0 : index
    %c0_8 = arith.constant 0 : index
    %c0_9 = arith.constant 0 : index
    %c0_10 = arith.constant 0 : index
    %4 = vector.load %arg4[%c0_7, %c0_8, %c0_9, %c0_10] : memref<1x1x8x8xf32, #tpu.memory_space<vmem>>, vector<1x1x8x8xf32>
    %5 = vector.shape_cast %4 : vector<1x1x8x8xf32> to vector<8x8xf32>
    %cst = arith.constant dense<0.000000e+00> : vector<8x8xf32>
    %6 = tpu.matmul %1, %3, %cst {dimension_numbers = #tpu.dot_dimension_numbers<[1], [1], [0], [0], [0, 0, 1, 0], [], []>} : vector<8x8xf32>, vector<8x8xf32>, vector<8x8xf32> -> vector<8x8xf32>
    %cst_11 = arith.constant 0.353553385 : f32
    %7 = vector.broadcast %cst_11 : f32 to vector<8x8xf32>
    %8 = arith.mulf %6, %7 : vector<8x8xf32>
    %c0_12 = arith.constant 0 : index
    %c0_13 = arith.constant 0 : index
    %9 = vector.load %arg5[%c0_12, %c0_13] : memref<8x8xf32, #tpu.memory_space<vmem>>, vector<8x8xf32>
    %10 = arith.addf %8, %9 : vector<8x8xf32>
    %cst_14 = arith.constant dense<0xFF800000> : vector<8xf32>
    %11 = vector.multi_reduction <maximumf>, %10, %cst_14 [1] : vector<8x8xf32> to vector<8xf32>
    %cst_15 = arith.constant 0xFF800000 : f32
    %12 = vector.broadcast %cst_15 : f32 to vector<8xf32>
    %13 = arith.maximumf %12, %11 : vector<8xf32>
    %14 = vector.shape_cast %13 : vector<8xf32> to vector<8x1xf32>
    %15 = vector.broadcast %14 : vector<8x1xf32> to vector<8x8xf32>
    %16 = arith.subf %10, %15 : vector<8x8xf32>
    %17 = math.exp %16 : vector<8x8xf32>
    %cst_16 = arith.constant dense<0.000000e+00> : vector<8xf32>
    %18 = vector.multi_reduction <add>, %17, %cst_16 [1] : vector<8x8xf32> to vector<8xf32>
    %19 = vector.shape_cast %18 : vector<8xf32> to vector<8x1xf32>
    %20 = vector.broadcast %19 : vector<8x1xf32> to vector<8x8xf32>
    %21 = arith.divf %17, %20 : vector<8x8xf32>
    %cst_17 = arith.constant dense<0.000000e+00> : vector<8x8xf32>
    %22 = tpu.matmul %21, %5, %cst_17 {dimension_numbers = #tpu.dot_dimension_numbers<[1], [0], [0], [1], [0, 0, 1, 1], [], []>} : vector<8x8xf32>, vector<8x8xf32>, vector<8x8xf32> -> vector<8x8xf32>
    %c0_18 = arith.constant 0 : index
    %c0_19 = arith.constant 0 : index
    %c0_20 = arith.constant 0 : index
    %c0_21 = arith.constant 0 : index
    %23 = vector.load %arg6[%c0_18, %c0_19, %c0_20, %c0_21] : memref<1x1x8x8xf32, #tpu.memory_space<vmem>>, vector<1x1x8x8xf32>
    %24 = vector.shape_cast %23 : vector<1x1x8x8xf32> to vector<8x8xf32>
    %25 = vector.shape_cast %22 : vector<8x8xf32> to vector<1x1x8x8xf32>
    tpu.vector_store %arg6[%c0_18, %c0_19, %c0_20, %c0_21], %25 {strides = array<i32>} : memref<1x1x8x8xf32, #tpu.memory_space<vmem>>, vector<1x1x8x8xf32>,
    return
  }
  func.func @transform_0(%arg0: i32, %arg1: i32) -> (i32, i32, i32, i32) {
    %c0_i32 = arith.constant 0 : i32
    %c0_i32_0 = arith.constant 0 : i32
    %c0_i32_1 = arith.constant 0 : i32
    return %arg0, %arg1, %c0_i32, %c0_i32_0 : i32, i32, i32, i32
  }
  func.func @transform_1(%arg0: i32, %arg1: i32) -> (i32, i32, i32, i32) {
    %c0_i32 = arith.constant 0 : i32
    %c0_i32_0 = arith.constant 0 : i32
    %c0_i32_1 = arith.constant 0 : i32
    return %arg0, %arg1, %c0_i32, %c0_i32_0 : i32, i32, i32, i32
  }
  func.func @transform_2(%arg0: i32, %arg1: i32) -> (i32, i32, i32, i32) {
    %c0_i32 = arith.constant 0 : i32
    %c0_i32_0 = arith.constant 0 : i32
    %c0_i32_1 = arith.constant 0 : i32
    return %arg0, %arg1, %c0_i32, %c0_i32_0 : i32, i32, i32, i32
  }
  func.func @transform_3(%arg0: i32, %arg1: i32) -> (i32, i32) {
    %c0_i32 = arith.constant 0 : i32
    %c0_i32_0 = arith.constant 0 : i32
    %c0_i32_1 = arith.constant 0 : i32
    return %c0_i32, %c0_i32_0 : i32, i32
  }
  func.func @transform_4(%arg0: i32, %arg1: i32) -> (i32, i32, i32, i32) {
    %c0_i32 = arith.constant 0 : i32
    %c0_i32_0 = arith.constant 0 : i32
    %c0_i32_1 = arith.constant 0 : i32
    return %arg0, %arg1, %c0_i32, %c0_i32_0 : i32, i32, i32, i32
  }
}

module attributes {stable_mosaic.version = 11 : i64} {
  func.func @linear_kernel(%arg0: i32, %arg1: i32, %arg2: memref<16x32xf32, #tpu.memory_space<vmem>>, %arg3: memref<32x32xf32, #tpu.memory_space<vmem>>, %arg4: memref<16x32xf32, #tpu.memory_space<vmem>>) attributes {dimension_semantics = [#tpu.dimension_semantics<parallel>, #tpu.dimension_semantics<parallel>], iteration_bounds = array<i64: 1, 1>, scalar_prefetch = 0 : i64, scratch_operands = 0 : i64, tpu.core_type = #tpu.core_type<tc>, window_params = [{transform_indices = @transform_0, window_bounds = array<i64: 16, 32>}, {transform_indices = @transform_1, window_bounds = array<i64: 32, 32>}, {transform_indices = @transform_2, window_bounds = array<i64: 16, 32>}]} {
    %c0 = arith.constant 0 : index
    %c0_0 = arith.constant 0 : index
    %0 = vector.load %arg2[%c0, %c0_0] : memref<16x32xf32, #tpu.memory_space<vmem>>, vector<16x32xf32>
    %c0_1 = arith.constant 0 : index
    %c0_2 = arith.constant 0 : index
    %1 = vector.load %arg3[%c0_1, %c0_2] : memref<32x32xf32, #tpu.memory_space<vmem>>, vector<32x32xf32>
    %cst = arith.constant dense<0.000000e+00> : vector<16x32xf32>
    %2 = tpu.matmul %0, %1, %cst {dimension_numbers = #tpu.dot_dimension_numbers<[1], [1], [0], [0], [0, 0, 1, 0], [], []>} : vector<16x32xf32>, vector<32x32xf32>, vector<16x32xf32> -> vector<16x32xf32>
    %c0_3 = arith.constant 0 : index
    %c0_4 = arith.constant 0 : index
    %3 = vector.load %arg4[%c0_3, %c0_4] : memref<16x32xf32, #tpu.memory_space<vmem>>, vector<16x32xf32>
    tpu.vector_store %arg4[%c0_3, %c0_4], %2 {strides = array<i32>} : memref<16x32xf32, #tpu.memory_space<vmem>>, vector<16x32xf32>,
    return
  }
  func.func @transform_0(%arg0: i32, %arg1: i32) -> (i32, i32) {
    %c0_i32 = arith.constant 0 : i32
    %c0_i32_0 = arith.constant 0 : i32
    return %arg0, %c0_i32 : i32, i32
  }
  func.func @transform_1(%arg0: i32, %arg1: i32) -> (i32, i32) {
    %c0_i32 = arith.constant 0 : i32
    %c0_i32_0 = arith.constant 0 : i32
    return %arg1, %c0_i32 : i32, i32
  }
  func.func @transform_2(%arg0: i32, %arg1: i32) -> (i32, i32) {
    %c0_i32 = arith.constant 0 : i32
    return %arg0, %arg1 : i32, i32
  }
}

module attributes {stable_mosaic.version = 11 : i64} {
  func.func @rmsnorm_kernel(%arg0: i32, %arg1: memref<16x32xf32, #tpu.memory_space<vmem>>, %arg2: memref<1x32xf32, #tpu.memory_space<vmem>>, %arg3: memref<16x32xf32, #tpu.memory_space<vmem>>) attributes {dimension_semantics = [#tpu.dimension_semantics<parallel>], iteration_bounds = array<i64: 1>, scalar_prefetch = 0 : i64, scratch_operands = 0 : i64, tpu.core_type = #tpu.core_type<tc>, window_params = [{transform_indices = @transform_0, window_bounds = array<i64: 16, 32>}, {pipeline_mode = #tpu.pipeline_mode<synchronous>, transform_indices = @transform_1, window_bounds = array<i64: 1, 32>}, {transform_indices = @transform_2, window_bounds = array<i64: 16, 32>}]} {
    %c0 = arith.constant 0 : index
    %c0_0 = arith.constant 0 : index
    %0 = vector.load %arg1[%c0, %c0_0] : memref<16x32xf32, #tpu.memory_space<vmem>>, vector<16x32xf32>
    %1 = arith.mulf %0, %0 : vector<16x32xf32>
    %cst = arith.constant dense<0.000000e+00> : vector<16xf32>
    %2 = vector.multi_reduction <add>, %1, %cst [1] : vector<16x32xf32> to vector<16xf32>
    %3 = vector.shape_cast %2 : vector<16xf32> to vector<16x1xf32>
    %cst_1 = arith.constant 3.200000e+01 : f32
    %4 = vector.broadcast %cst_1 : f32 to vector<16x1xf32>
    %5 = arith.divf %3, %4 : vector<16x1xf32>
    %cst_2 = arith.constant 9.99999974E-6 : f32
    %6 = vector.broadcast %cst_2 : f32 to vector<16x1xf32>
    %7 = arith.addf %5, %6 : vector<16x1xf32>
    %8 = math.rsqrt %7 : vector<16x1xf32>
    %9 = vector.broadcast %8 : vector<16x1xf32> to vector<16x32xf32>
    %10 = arith.mulf %0, %9 : vector<16x32xf32>
    %c0_3 = arith.constant 0 : index
    %c0_4 = arith.constant 0 : index
    %11 = vector.load %arg2[%c0_3, %c0_4] : memref<1x32xf32, #tpu.memory_space<vmem>>, vector<1x32xf32>
    %12 = vector.broadcast %11 : vector<1x32xf32> to vector<16x32xf32>
    %13 = arith.mulf %10, %12 : vector<16x32xf32>
    %c0_5 = arith.constant 0 : index
    %c0_6 = arith.constant 0 : index
    %14 = vector.load %arg3[%c0_5, %c0_6] : memref<16x32xf32, #tpu.memory_space<vmem>>, vector<16x32xf32>
    tpu.vector_store %arg3[%c0_5, %c0_6], %13 {strides = array<i32>} : memref<16x32xf32, #tpu.memory_space<vmem>>, vector<16x32xf32>,
    return
  }
  func.func @transform_0(%arg0: i32) -> (i32, i32) {
    %c0_i32 = arith.constant 0 : i32
    %c0_i32_0 = arith.constant 0 : i32
    return %arg0, %c0_i32 : i32, i32
  }
  func.func @transform_1(%arg0: i32) -> (i32, i32) {
    %c0_i32 = arith.constant 0 : i32
    %c0_i32_0 = arith.constant 0 : i32
    %c0_i32_1 = arith.constant 0 : i32
    return %c0_i32, %c0_i32_0 : i32, i32
  }
  func.func @transform_2(%arg0: i32) -> (i32, i32) {
    %c0_i32 = arith.constant 0 : i32
    %c0_i32_0 = arith.constant 0 : i32
    return %arg0, %c0_i32 : i32, i32
  }
}

module attributes {stable_mosaic.version = 11 : i64} {
  func.func @moe_ffn_kernel(%arg0: i32, %arg1: i32, %arg2: i32, %arg3: memref<8xi32, #tpu.memory_space<smem>>, %arg4: memref<16x32xf32, #tpu.memory_space<vmem>>, %arg5: memref<1x64x32xf32, #tpu.memory_space<vmem>>, %arg6: memref<1x64x32xf32, #tpu.memory_space<vmem>>, %arg7: memref<1x32x64xf32, #tpu.memory_space<vmem>>, %arg8: memref<1x16x1xf32, #tpu.memory_space<vmem>>, %arg9: memref<16x32xf32, #tpu.memory_space<vmem>>) attributes {dimension_semantics = [#tpu.dimension_semantics<parallel>, #tpu.dimension_semantics<arbitrary>, #tpu.dimension_semantics<arbitrary>], iteration_bounds = array<i64: 1, 8, 1>, scalar_prefetch = 1 : i64, scratch_operands = 0 : i64, tpu.core_type = #tpu.core_type<tc>, window_params = [{transform_indices = @transform_0, window_bounds = array<i64: 16, 32>}, {transform_indices = @transform_1, window_bounds = array<i64: 1, 64, 32>}, {transform_indices = @transform_2, window_bounds = array<i64: 1, 64, 32>}, {transform_indices = @transform_3, window_bounds = array<i64: 1, 32, 64>}, {transform_indices = @transform_4, window_bounds = array<i64: 1, 16, 1>}, {transform_indices = @transform_5, window_bounds = array<i64: 16, 32>}]} {
    %c0_i32 = arith.constant 0 : i32
    %0 = arith.cmpi eq, %arg1, %c0_i32 : i32
    %c0_i32_0 = arith.constant 0 : i32
    %1 = arith.cmpi eq, %arg2, %c0_i32_0 : i32
    %2 = arith.andi %0, %1 : i1
    %3 = arith.extui %2 : i1 to i32
    %c0_i32_1 = arith.constant 0 : i32
    %4 = arith.cmpi ne, %3, %c0_i32_1 : i32
    scf.if %4 {
      %cst = arith.constant 0.000000e+00 : f32
      %10 = vector.broadcast %cst : f32 to vector<16x32xf32>
      %c0 = arith.constant 0 : index
      %c0_4 = arith.constant 0 : index
      %11 = vector.load %arg9[%c0, %c0_4] : memref<16x32xf32, #tpu.memory_space<vmem>>, vector<16x32xf32>
      tpu.vector_store %arg9[%c0, %c0_4], %10 {strides = array<i32>} : memref<16x32xf32, #tpu.memory_space<vmem>>, vector<16x32xf32>,
    } else {
    }
    %5 = arith.index_cast %arg1 : i32 to index
    %6 = memref.load %arg3[%5] : memref<8xi32, #tpu.memory_space<smem>>
    %c0_i32_2 = arith.constant 0 : i32
    %7 = arith.cmpi sgt, %6, %c0_i32_2 : i32
    %8 = arith.extui %7 : i1 to i32
    %c0_i32_3 = arith.constant 0 : i32
    %9 = arith.cmpi ne, %8, %c0_i32_3 : i32
    scf.if %9 {
      %c0 = arith.constant 0 : index
      %c0_4 = arith.constant 0 : index
      %10 = vector.load %arg4[%c0, %c0_4] : memref<16x32xf32, #tpu.memory_space<vmem>>, vector<16x32xf32>
      %11 = arith.truncf %10 : vector<16x32xf32> to vector<16x32xbf16>
      %c0_5 = arith.constant 0 : index
      %c0_6 = arith.constant 0 : index
      %c0_7 = arith.constant 0 : index
      %12 = vector.load %arg5[%c0_5, %c0_6, %c0_7] : memref<1x64x32xf32, #tpu.memory_space<vmem>>, vector<1x64x32xf32>
      %13 = vector.shape_cast %12 : vector<1x64x32xf32> to vector<64x32xf32>
      %14 = arith.truncf %13 : vector<64x32xf32> to vector<64x32xbf16>
      %c0_8 = arith.constant 0 : index
      %c0_9 = arith.constant 0 : index
      %c0_10 = arith.constant 0 : index
      %15 = vector.load %arg6[%c0_8, %c0_9, %c0_10] : memref<1x64x32xf32, #tpu.memory_space<vmem>>, vector<1x64x32xf32>
      %16 = vector.shape_cast %15 : vector<1x64x32xf32> to vector<64x32xf32>
      %17 = arith.truncf %16 : vector<64x32xf32> to vector<64x32xbf16>
      %c0_11 = arith.constant 0 : index
      %c0_12 = arith.constant 0 : index
      %c0_13 = arith.constant 0 : index
      %18 = vector.load %arg7[%c0_11, %c0_12, %c0_13] : memref<1x32x64xf32, #tpu.memory_space<vmem>>, vector<1x32x64xf32>
      %19 = vector.shape_cast %18 : vector<1x32x64xf32> to vector<32x64xf32>
      %20 = arith.truncf %19 : vector<32x64xf32> to vector<32x64xbf16>
      %cst = arith.constant dense<0.000000e+00> : vector<16x64xf32>
      %21 = tpu.matmul %11, %14, %cst {dimension_numbers = #tpu.dot_dimension_numbers<[1], [1], [0], [0], [0, 0, 1, 0], [], []>} : vector<16x32xbf16>, vector<64x32xbf16>, vector<16x64xf32> -> vector<16x64xf32>
      %cst_14 = arith.constant dense<0.000000e+00> : vector<16x64xf32>
      %22 = tpu.matmul %11, %17, %cst_14 {dimension_numbers = #tpu.dot_dimension_numbers<[1], [1], [0], [0], [0, 0, 1, 0], [], []>} : vector<16x32xbf16>, vector<64x32xbf16>, vector<16x64xf32> -> vector<16x64xf32>
      %23 = arith.negf %21 : vector<16x64xf32>
      %24 = math.exp %23 : vector<16x64xf32>
      %cst_15 = arith.constant 1.000000e+00 : f32
      %25 = vector.broadcast %cst_15 : f32 to vector<16x64xf32>
      %26 = arith.addf %25, %24 : vector<16x64xf32>
      %27 = arith.divf %25, %26 : vector<16x64xf32>
      %28 = arith.mulf %21, %27 : vector<16x64xf32>
      %29 = arith.mulf %28, %22 : vector<16x64xf32>
      %30 = arith.truncf %29 : vector<16x64xf32> to vector<16x64xbf16>
      %cst_16 = arith.constant dense<0.000000e+00> : vector<16x32xf32>
      %31 = tpu.matmul %30, %20, %cst_16 {dimension_numbers = #tpu.dot_dimension_numbers<[1], [1], [0], [0], [0, 0, 1, 0], [], []>} : vector<16x64xbf16>, vector<32x64xbf16>, vector<16x32xf32> -> vector<16x32xf32>
      %c0_17 = arith.constant 0 : index
      %c0_18 = arith.constant 0 : index
      %32 = vector.load %arg9[%c0_17, %c0_18] : memref<16x32xf32, #tpu.memory_space<vmem>>, vector<16x32xf32>
      %c0_19 = arith.constant 0 : index
      %c0_20 = arith.constant 0 : index
      %c0_21 = arith.constant 0 : index
      %33 = vector.load %arg8[%c0_19, %c0_20, %c0_21] : memref<1x16x1xf32, #tpu.memory_space<vmem>>, vector<1x16x1xf32>
      %34 = vector.shape_cast %33 : vector<1x16x1xf32> to vector<16x1xf32>
      %35 = vector.broadcast %34 : vector<16x1xf32> to vector<16x32xf32>
      %36 = arith.mulf %35, %31 : vector<16x32xf32>
      %37 = arith.addf %32, %36 : vector<16x32xf32>
      %c0_22 = arith.constant 0 : index
      %c0_23 = arith.constant 0 : index
      %38 = vector.load %arg9[%c0_22, %c0_23] : memref<16x32xf32, #tpu.memory_space<vmem>>, vector<16x32xf32>
      tpu.vector_store %arg9[%c0_22, %c0_23], %37 {strides = array<i32>} : memref<16x32xf32, #tpu.memory_space<vmem>>, vector<16x32xf32>,
    } else {
    }
    return
  }
  func.func @transform_0(%arg0: i32, %arg1: i32, %arg2: i32, %arg3: memref<8xi32, #tpu.memory_space<smem>>) -> (i32, i32) {
    %c0_i32 = arith.constant 0 : i32
    %c0_i32_0 = arith.constant 0 : i32
    return %arg0, %c0_i32 : i32, i32
  }
  func.func @transform_1(%arg0: i32, %arg1: i32, %arg2: i32, %arg3: memref<8xi32, #tpu.memory_space<smem>>) -> (i32, i32, i32) {
    %c0_i32 = arith.constant 0 : i32
    %c0_i32_0 = arith.constant 0 : i32
    return %arg1, %arg2, %c0_i32 : i32, i32, i32
  }
  func.func @transform_2(%arg0: i32, %arg1: i32, %arg2: i32, %arg3: memref<8xi32, #tpu.memory_space<smem>>) -> (i32, i32, i32) {
    %c0_i32 = arith.constant 0 : i32
    %c0_i32_0 = arith.constant 0 : i32
    return %arg1, %arg2, %c0_i32 : i32, i32, i32
  }
  func.func @transform_3(%arg0: i32, %arg1: i32, %arg2: i32, %arg3: memref<8xi32, #tpu.memory_space<smem>>) -> (i32, i32, i32) {
    %c0_i32 = arith.constant 0 : i32
    %c0_i32_0 = arith.constant 0 : i32
    return %arg1, %c0_i32, %arg2 : i32, i32, i32
  }
  func.func @transform_4(%arg0: i32, %arg1: i32, %arg2: i32, %arg3: memref<8xi32, #tpu.memory_space<smem>>) -> (i32, i32, i32) {
    %c0_i32 = arith.constant 0 : i32
    %c0_i32_0 = arith.constant 0 : i32
    return %arg1, %arg0, %c0_i32 : i32, i32, i32
  }
  func.func @transform_5(%arg0: i32, %arg1: i32, %arg2: i32, %arg3: memref<8xi32, #tpu.memory_space<smem>>) -> (i32, i32) {
    %c0_i32 = arith.constant 0 : i32
    %c0_i32_0 = arith.constant 0 : i32
    return %arg0, %c0_i32 : i32, i32
  }
}

</mosaic_0001>

<bundles_post_ra>
// kernel: _lambda_.5
= control target key start
LH: loop header
LB: loop body
LE: loop exit
PB: predicated region body
PF: predicated region fallthrough
CT: control target
= control target key end

     0   :  { %vm18_vm0 = vcmask 261120   ;;  %vm156_vm1 = vcmask 523264   ;;  %s286_s0 = inlined_call_operand.vmem [shape: f32[16,32], index: 0, kind: input, shape index: {}]   ;;  %s287_s2 = inlined_call_operand.vmem [shape: f32[64,32], index: 2, kind: input, shape index: {}]   ;;  %s288_s1 = inlined_call_operand.vmem [shape: f32[1,32], index: 1, kind: input, shape index: {}]   ;;  %s289_s3 = inlined_call_operand.vmem [shape: f32[16,64], index: 3, kind: output, shape index: {}]  }
   0x1   :  { %v14_v0 = vld [vmem:[%s286_s0] sm:$0xff]  ;;  %v15_v1 = vld [vmem:[%s286_s0 + $0x8] sm:$0xff]  ;;  %v50_v2 = vld [vmem:[%s287_s2 + $0x38] sm:$0xff] }
   0x2   :  { %v16_v3 = vmul.f32 %v14_v0, %v14_v0  ;;  %v17_v4 = vmul.f32 %v15_v1, %v15_v1  ;;  %184 = vmatprep.subr.msk.mxu0 %vm18_vm0, %v50_v2  ;;  %v49_v5 = vld [vmem:[%s287_s2 + $0x30] sm:$0xff]  ;;  %v48_v8 = vld [vmem:[%s287_s2 + $0x28] sm:$0xff]  ;;  %v47_v9 = vld [vmem:[%s287_s2 + $0x20] sm:$0xff] }
   0x3   :  { %185 = vmatpush3.xpose.msk.msra.mxu0 %vm18_vm0, %v50_v2  ;;  %v46_v10 = vld [vmem:[%s287_s2 + $0x18] sm:$0xff]  ;;  %v45_v11 = vld [vmem:[%s287_s2 + $0x10] sm:$0xff]  ;;  %v44_v12 = vld [vmem:[%s287_s2 + $0x8] sm:$0xff] }
   0x4   :  { %v19_v6 = vsel %vm18_vm0, %v16_v3, 0.0  ;;  %186 = vmatprep.subr.msk.mxu0 %vm18_vm0, %v49_v5  ;;  %v22_v7 = vsel %vm18_vm0, %v17_v4, 0.0  ;;  %v43_v13 = vld [vmem:[%s287_s2] sm:$0xff] }
   0x5   :  { %20 = vadd.xlane.f32.xlu0 %v19_v6  ;;  %v163_v21 = vld [vmem:[%s288_s1] ss:$0 sm:$0xff] }
   0x7   :  { %187 = vmatpush3.xpose.msk.msra.mxu0 %vm18_vm0, %v49_v5 }
   0x8   :  { %188 = vmatprep.subr.msk.mxu0 %vm18_vm0, %v48_v8 }
   0x9   :  { %23 = vadd.xlane.f32.xlu0 %v22_v7 }
   0xb   :  { %189 = vmatpush3.xpose.msk.msra.mxu0 %vm18_vm0, %v48_v8 }
   0xc   :  { %190 = vmatprep.subr.msk.mxu0 %vm18_vm0, %v47_v9 }
   0xf   :  { %191 = vmatpush3.xpose.msk.msra.mxu0 %vm18_vm0, %v47_v9 }
  0x10   :  { %192 = vmatprep.subr.msk.mxu0 %vm18_vm0, %v46_v10 }
  0x13   :  { %193 = vmatpush3.xpose.msk.msra.mxu0 %vm18_vm0, %v46_v10 }
  0x14   :  { %194 = vmatprep.subr.msk.mxu0 %vm18_vm0, %v45_v11 }
  0x17   :  { %195 = vmatpush3.xpose.msk.msra.mxu0 %vm18_vm0, %v45_v11 }
  0x18   :  { %196 = vmatprep.subr.msk.mxu0 %vm18_vm0, %v44_v12 }
  0x1b   :  { %197 = vmatpush3.xpose.msk.msra.mxu0 %vm18_vm0, %v44_v12 }
  0x1c   :  { %198 = vmatprep.subr.msk.mxu0 %vm18_vm0, %v43_v13 }
  0x1f   :  { %199 = vmatpush3.xpose.msk.msra.mxu0 %vm18_vm0, %v43_v13 }
  0x8e   :  { %v21_v14 = vpop.xlane.xlu0 %20 }
  0x8f   :  { %v26_v15 = vmul.f32 0.03125, %v21_v14 }
  0x91   :  { %v28_v16 = vadd.f32 1e-05, %v26_v15 }
  0x92   :  { %v24_v17 = vpop.xlane.xlu0 %23 }
  0x93   :  { %203 = vrsqrt.f32 %v28_v16  ;;  %v27_v18 = vmul.f32 0.03125, %v24_v17 }
  0x95   :  { %v29_v19 = vadd.f32 1e-05, %v27_v18 }
  0x97   :  { %205 = vrsqrt.f32 %v29_v19 }
  0xa0   :  { %v204_v20 = vpop.eup %203 }
  0xa1   :  { %v32_v22 = vmul.f32 %v204_v20, %v14_v0 }
  0xa3   :  { %v41_v23 = vmul.f32 %v163_v21, %v32_v22 }
  0xa4   :  { %v206_v24 = vpop.eup %205 }
  0xa5   :  { %v33_v25 = vmul.f32 %v206_v24, %v15_v1  ;;  %200 = vmatprep.mubr.msk.f32.mxu0 %vm18_vm0, %v41_v23 }
  0xa7   :  { %v42_v26 = vmul.f32 %v163_v21, %v33_v25 }
  0xa9   :  { %201 = vmatmul.mubr.msk.f32.vlgmr.msra.gmra.mxu0 %vm18_vm0, %v42_v26 }
 0x169   :  { %v202_v27 = vpop.f32.mrf.mxu0 }
 0x16a   :  { %158 = vst.msk [vmem:[%s289_s3 + $0x8] sm:$0xff] %vm156_vm1, %v202_v27 }
 0x16b   :  { %v147_v28 = vpop.f32.mrf.mxu0 }
 0x16c   :  { %157 = vst.msk [vmem:[%s289_s3] sm:$0xff] %vm156_vm1, %v147_v28 }

// kernel: _lambda_.6
= control target key start
LH: loop header
LB: loop body
LE: loop exit
PB: predicated region body
PF: predicated region fallthrough
CT: control target
= control target key end

     0   :  { %s726_s15 = smov 0   ;;  %s728_s16 = smov 0   ;;  %s798_s0 = inlined_call_operand.vmem [shape: f32[2,4,8,8], index: 0, kind: input, shape index: {}]   ;;  %s799_s1 = inlined_call_operand.vmem [shape: f32[2,4,8,8], index: 1, kind: input, shape index: {}]   ;;  %s800_s2 = inlined_call_operand.vmem [shape: f32[2,4,8,8], index: 2, kind: input, shape index: {}]   ;;  %s801_s3 = inlined_call_operand.vmem [shape: f32[8,8], index: 3, kind: input, shape index: {}]   ;;  %s802_s4 = inlined_call_operand.vmem [shape: f32[2,4,8,8], index: 4, kind: output, shape index: {}]  }
   0x1   :  { %s730_s17 = smov 0   ;;  %s732_s18 = smov 0  }
   0x2   :  { %s734_s19 = smov 0  }
   0x3 LB: > { %s23_s20 = sadd.s32 1, %s689_s17  ;;  %s26_s21 = sadd.s32 1, %s693_s18  ;;  %s697_s19 = sphi %s734_s19, %s14_s19   ;;  %s693_s18 = sphi %s732_s18, %s806_s18   ;;  %s689_s17 = sphi %s730_s17, %s805_s17   ;;  %s685_s16 = sphi %s728_s16, %s804_s16   ;;  %s681_s15 = sphi %s726_s15, %s803_s15  }
   0x4   : > { %p24_p0 = scmp.ge.s32.totalorder %s23_s20, 4  ;;  %p585_p1 = scmp.ge.s32.totalorder %s697_s19, 1 }
   0x5   : > { %p211_p2 = scmp.lt.s32.totalorder %s697_s19, 9 }
   0x6   : > { %s808_s20 = smov (%p24_p0, %s23_s20), 0  ;;  %s810_s21 = smov (!%p24_p0, %s26_s21), %s693_s18 }
   0x7   : > { %p212_p3 = pnand %p585_p1, %p211_p2  ;;  %p28_p4 = scmp.ge.s32.totalorder %s810_s21, 2 }
   0x8   : > { %p259_p5 = scmp.lt.s32.totalorder (!%p212_p3), %s685_s16, 1  ;;  %p261_p6 = scmp.lt.s32.totalorder (!%p212_p3), %s681_s15, 3 }
   0x9   : > { %s812_s21 = smov (%p28_p4, %s810_s21), 0  ;;  %215 = sbr.rel (%p212_p3) target bundleno = 727 (0x2d7), region = 36 }
   0xe   : > { %v699_v0 = vmov 0.0   ;;  %vm700_vm0 = vmmov 0   ;;  %s814_s16 = smov (!%p259_p5, %s685_s16), 1  ;;  %s816_s15 = smov (!%p261_p6, %s681_s15), 3  ;;  %vm294_vm1 = vcmask 64512   ;;  %v372_v4 = vld [vmem:[%s801_s3] sm:$0xff] }
   0xf   : > { %603 = vmatprep.subr.mxu0 %v699_v0  ;;  %605 = vmatprep.mubr.msk.f32.mxu0 %vm700_vm0, %v699_v0  ;;  %s586_s22 = sshll.u32 %s814_s16, 2 }
  0x10   : > { %608 = vmatprep.subr.mxu1 %v699_v0  ;;  %610 = vmatprep.mubr.msk.f32.mxu1 %vm700_vm0, %v699_v0  ;;  %s264_s23 = sadd.s32 %s586_s22, %s816_s15 }
  0x11   : > { %s756_s24 = sshll.u32 %s264_s23, 3 }
  0x12   : > { %s274_s27 = scalar_lea.vmem %s799_s1, %s756_s24  ;;  %s266_s30 = scalar_lea.vmem %s798_s0, %s756_s24 }
  0x13   : > { %v292_v1 = vld [vmem:[%s274_s27] sm:$0xff]  ;;  %s282_s9 = scalar_lea.vmem %s800_s2, %s756_s24  ;;  %s290_s12 = scalar_lea.vmem %s802_s4, %s756_s24 }
  0x14   : > { %604 = vmatpush3.xpose.msk.msra.mxu0 %vm294_vm1, %v292_v1  ;;  %v291_v2 = vld [vmem:[%s266_s30] sm:$0xff] }
  0x15   : > { %v293_v14 = vld [vmem:[%s282_s9] sm:$0xff] }
  0x16   : > { %609 = vmatpush3.msra.mxu1 %v293_v14 }
  0x17   : > { %606 = vmatmul.mubr.msk.f32.vlgmr.msra.gmra.mxu0 %vm294_vm1, %v291_v2 }
  0xd7   : > { %v367_v3 = vpop.f32.mrf.mxu0 }
  0xd8   : > { %v371_v5 = vmul.f32 0.35355338, %v367_v3 }
  0xd9   : > { %v607_v6 = vpop.f32.mrf.mxu0 }
  0xda   : > { %v373_v7 = vadd.f32 %v372_v4, %v371_v5 }
  0xdc   : > { %v374_v8 = vsel %vm294_vm1, %v373_v7, -inf }
  0xdd   : > { %375 = vmax.xlane.f32.xlu0 %v374_v8 }
 0x166   : > { %v376_v9 = vpop.xlane.xlu0 %375 }
 0x167   : > { %v377_v10 = vsub.f32 %v373_v7, %v376_v9 }
 0x169   : > { %v378_v11 = vmul.f32 1.442695, %v377_v10 }
 0x16b   : > { %655 = vpow2.f32 %v378_v11 }
 0x178   : > { %v656_v12 = vpop.eup %655 }
 0x179   : > { %v380_v13 = vsel %vm294_vm1, %v656_v12, 0.0 }
 0x17a   : > { %381 = vadd.xlane.f32.xlu0 %v380_v13 }
 0x203   : > { %v382_v15 = vpop.xlane.xlu0 %381 }
 0x204   : > { %657 = vrcp.f32 %v382_v15 }
 0x211   : > { %v658_v16 = vpop.eup %657 }
 0x212   : > { %v384_v17 = vmul.f32 %v658_v16, %v656_v12 }
 0x214   : > { %611 = vmatmul.mubr.msk.f32.vlgmr.msra.gmra.mxu1 %vm294_vm1, %v384_v17 }
 0x2d4   : > { %v454_v18 = vpop.f32.mrf.mxu1 }
 0x2d5   : > { %458 = vst.msk [vmem:[%s290_s12] sm:$0xff] %vm294_vm1, %v454_v18 }
 0x2d6   : > { %v612_v19 = vpop.f32.mrf.mxu1 }
 0x2d7 PF: > { %s14_s19 = sadd.s32 1, %s697_s19   ;;  %s803_s15 = smov %s689_s17 }
 0x2d8   : > { %p11_p7 = scmp.ge.s32.totalorder %s14_s19, 10   ;;  %s804_s16 = smov %s693_s18 }
 0x2d9   : > { %s805_s17 = smov %s808_s20  ;;  %s806_s18 = smov %s812_s21 }
 0x2da   :  { %13 = sbr.rel (!%p11_p7) target bundleno = 3 (0x3), region = 72 }

// kernel: _lambda_.7
= control target key start
LH: loop header
LB: loop body
LE: loop exit
PB: predicated region body
PF: predicated region fallthrough
CT: control target
= control target key end

     0   :  { %vm17_vm0 = vcmask 261120   ;;  %s191_s1 = inlined_call_operand.vmem [shape: f32[32,32], index: 1, kind: input, shape index: {}]   ;;  %s192_s0 = inlined_call_operand.vmem [shape: f32[16,32], index: 0, kind: input, shape index: {}]   ;;  %s193_s2 = inlined_call_operand.vmem [shape: f32[16,32], index: 2, kind: output, shape index: {}]  }
   0x1   :  { %v16_v0 = vld [vmem:[%s191_s1 + $0x18] sm:$0xff]  ;;  %v15_v1 = vld [vmem:[%s191_s1 + $0x10] sm:$0xff]  ;;  %v11_v2 = vld [vmem:[%s192_s0] sm:$0xff] }
   0x2   :  { %129 = vmatprep.subr.msk.mxu0 %vm17_vm0, %v16_v0  ;;  %137 = vmatprep.mubr.msk.f32.mxu0 %vm17_vm0, %v11_v2  ;;  %v14_v3 = vld [vmem:[%s191_s1 + $0x8] sm:$0xff]  ;;  %v13_v4 = vld [vmem:[%s191_s1] sm:$0xff] }
   0x3   :  { %130 = vmatpush3.xpose.msk.msra.mxu0 %vm17_vm0, %v16_v0  ;;  %v12_v5 = vld [vmem:[%s192_s0 + $0x8] sm:$0xff] }
   0x4   :  { %131 = vmatprep.subr.msk.mxu0 %vm17_vm0, %v15_v1 }
   0x7   :  { %132 = vmatpush3.xpose.msk.msra.mxu0 %vm17_vm0, %v15_v1 }
   0x8   :  { %133 = vmatprep.subr.msk.mxu0 %vm17_vm0, %v14_v3 }
   0xb   :  { %134 = vmatpush3.xpose.msk.msra.mxu0 %vm17_vm0, %v14_v3 }
   0xc   :  { %135 = vmatprep.subr.msk.mxu0 %vm17_vm0, %v13_v4 }
   0xf   :  { %136 = vmatpush3.xpose.msk.msra.mxu0 %vm17_vm0, %v13_v4 }
  0x12   :  { %138 = vmatmul.mubr.msk.f32.vlgmr.msra.gmra.mxu0 %vm17_vm0, %v12_v5 }
  0xd2   :  { %v139_v6 = vpop.f32.mrf.mxu0 }
  0xd3   :  { %112 = vst.msk [vmem:[%s193_s2 + $0x8] sm:$0xff] %vm17_vm0, %v139_v6 }
  0xd4   :  { %v102_v7 = vpop.f32.mrf.mxu0 }
  0xd5   :  { %111 = vst.msk [vmem:[%s193_s2] sm:$0xff] %vm17_vm0, %v102_v7 }

// kernel: _lambda_.8
= control target key start
LH: loop header
LB: loop body
LE: loop exit
PB: predicated region body
PF: predicated region fallthrough
CT: control target
= control target key end

     0   :  { %vm15_vm0 = vcmask 261120   ;;  %s85_s0 = inlined_call_operand.vmem [shape: f32[16,32], index: 0, kind: input, shape index: {}]   ;;  %s86_s1 = inlined_call_operand.vmem [shape: f32[1,32], index: 1, kind: input, shape index: {}]   ;;  %s87_s2 = inlined_call_operand.vmem [shape: f32[16,32], index: 2, kind: output, shape index: {}]  }
   0x1   :  { %v11_v0 = vld [vmem:[%s85_s0] sm:$0xff]  ;;  %v12_v1 = vld [vmem:[%s85_s0 + $0x8] sm:$0xff] }
   0x2   :  { %v13_v2 = vmul.f32 %v11_v0, %v11_v0  ;;  %v14_v3 = vmul.f32 %v12_v1, %v12_v1  ;;  %v46_v13 = vld [vmem:[%s86_s1] ss:$0 sm:$0xff] }
   0x4   :  { %v16_v4 = vsel %vm15_vm0, %v13_v2, 0.0  ;;  %v19_v5 = vsel %vm15_vm0, %v14_v3, 0.0 }
   0x5   :  { %17 = vadd.xlane.f32.xlu0 %v16_v4 }
   0x9   :  { %20 = vadd.xlane.f32.xlu0 %v19_v5 }
  0x8e   :  { %v18_v6 = vpop.xlane.xlu0 %17 }
  0x8f   :  { %v23_v7 = vmul.f32 0.03125, %v18_v6 }
  0x91   :  { %v25_v8 = vadd.f32 1e-05, %v23_v7 }
  0x92   :  { %v21_v9 = vpop.xlane.xlu0 %20 }
  0x93   :  { %47 = vrsqrt.f32 %v25_v8  ;;  %v24_v10 = vmul.f32 0.03125, %v21_v9 }
  0x95   :  { %v26_v11 = vadd.f32 1e-05, %v24_v10 }
  0x97   :  { %49 = vrsqrt.f32 %v26_v11 }
  0xa0   :  { %v48_v12 = vpop.eup %47 }
  0xa1   :  { %v29_v14 = vmul.f32 %v48_v12, %v11_v0 }
  0xa3   :  { %v38_v15 = vmul.f32 %v46_v13, %v29_v14 }
  0xa4   :  { %v50_v16 = vpop.eup %49 }
  0xa5   :  { %40 = vst.msk [vmem:[%s87_s2] sm:$0xff] %vm15_vm0, %v38_v15  ;;  %v30_v17 = vmul.f32 %v50_v16, %v12_v1 }
  0xa7   :  { %v39_v18 = vmul.f32 %v46_v13, %v30_v17 }
  0xa9   :  { %41 = vst.msk [vmem:[%s87_s2 + $0x8] sm:$0xff] %vm15_vm0, %v39_v18 }

// kernel: _lambda_.9
= control target key start
LH: loop header
LB: loop body
LE: loop exit
PB: predicated region body
PF: predicated region fallthrough
CT: control target
= control target key end

     0   :  { %s1083_s0 = inlined_call_operand.vmem [shape: s32[8], index: 0, kind: input, shape index: {}]   ;;  %s1084_s1 = inlined_call_operand.vmem [shape: f32[16,32], index: 1, kind: input, shape index: {}]   ;;  %s1085_s2 = inlined_call_operand.vmem [shape: f32[8,64,32], index: 2, kind: input, shape index: {}]   ;;  %s1086_s3 = inlined_call_operand.vmem [shape: f32[8,64,32], index: 3, kind: input, shape index: {}]   ;;  %s1087_s4 = inlined_call_operand.vmem [shape: f32[8,32,64], index: 4, kind: input, shape index: {}]   ;;  %s1088_s5 = inlined_call_operand.vmem [shape: f32[8,16,1], index: 5, kind: input, shape index: {}]   ;;  %s1089_s6 = inlined_call_operand.vmem [shape: f32[16,32], index: 6, kind: output, shape index: {}]  }
   0x1   :  { %s11_s23 = sshll.u32 %s1083_s0, 4  ;;  %s12_s23 = int_to_ptr.vmem [resolvable:$true] %s11_s23 }
   0x2   :  { %s891_s24 = scalar_lea.vmem %s12_s23, 16  ;;  %p896_p1 = scmp.lt.s32.totalorder %s12_s23, %s12_s23 }
   0x3   :  { %p892_p0 = scmp.ne.s32.totalorder %s12_s23, %s891_s24  ;;  %p897_p2 = scmp.lt.s32.totalorder %s891_s24, %s891_s24 }
   0x5   :  { %p898_p3 = por %p897_p2, %p896_p1 }
   0x7   :  { %p899_p4 = pnand %p898_p3, %p892_p0 }
   0x9   :  { %902 = shalt.err (!%p899_p4)  }
   0xa   :  { %s929_s25 = smov [#allocation3]  }
   0xb   :  { %14 = dma.vmem_to_smem %s12_s23, 16, %s929_s25, [#allocation2] }
   0xc   :  { %915 = dma.done.wait [#allocation2], 16 }
   0xd   :  { %916 = vsyncadd [#allocation2], 4294967280 }
   0xe   :  { %16 = sfence }
   0xf   :  { %s972_s26 = smov 0   ;;  %s974_s27 = smov 0  }
  0x10   :  { %s976_s28 = smov 0  }
  0x11 LB: > { %s37_s0 = sadd.s32 1, %s923_s27  ;;  %p783_p5 = scmp.ge.s32.totalorder %s927_s28, 1  ;;  %s927_s28 = sphi %s976_s28, %s22_s28   ;;  %s923_s27 = sphi %s974_s27, %s1091_s27   ;;  %s919_s26 = sphi %s972_s26, %s1090_s26  }
  0x12   : > { %p39_p6 = scmp.ge.s32.totalorder %s37_s0, 8  ;;  %p280_p7 = scmp.lt.s32.totalorder %s927_s28, 9 }
  0x14   : > { %s1093_s0 = smov (%p39_p6, %s37_s0), 0  ;;  %p281_p8 = pnand %p783_p5, %p280_p7 }
  0x15   : > { %p350_p9 = scmp.lt.s32.totalorder (!%p281_p8), %s919_s26, 7  ;;  %p394_p10 = scmp.eq.s32.totalorder (!%p281_p8), %s919_s26, 0 }
  0x16   : > { %284 = sbr.rel (%p281_p8) target bundleno = 518 (0x206), region = 40 }
  0x1b   : > { %s351_s29 = scalar_select %p350_p9, %s919_s26, 7  ;;  %vm400_vm0 = vcmask (%p394_p10), 261120   ;;  %v930_v0 = vmov (%p394_p10), 0.0  }
  0x1c   : > { %399 = sbr.rel (!%p394_p10) target bundleno = 33 (0x21), region = 44  ;;  %401 = vst.msk [vmem:[%s1089_s6] sm:$0xff] (%p394_p10), %vm400_vm0, %v930_v0  ;;  %402 = vst.msk [vmem:[%s1089_s6 + $0x8] sm:$0xff] (%p394_p10), %vm400_vm0, %v930_v0 }
  0x1d   : > { %s803_s30 = sshll.u32 %s351_s29, 6  ;;  %s805_s7 = sshll.u32 %s351_s29, 5 }
  0x1e   : > { %s993_s10 = scalar_lea.vmem %s1085_s2, %s803_s30  ;;  %s998_s13 = scalar_lea.vmem %s1086_s3, %s803_s30 }
  0x1f   : > { %s1003_s16 = scalar_lea.vmem %s1087_s4, %s805_s7  ;;  %s806_s17 = sshll.u32 %s351_s29, 4 }
  0x20   : > { %s1008_s20 = scalar_lea.vmem %s1088_s5, %s806_s17 }
  0x21 PF: > { %s403_s25 = sld [smem:[#allocation3 + %s919_s26]] }
  0x27   : > { %p793_p11 = scmp.le.s32.totalorder %s403_s25, 0 }
  0x29   : > { %407 = sbr.rel (%p793_p11) target bundleno = 518 (0x206), region = 48 }
  0x2e   : > { %v417_v1 = vld [vmem:[%s993_s10 + $0x30] sm:$0xff]  ;;  %v418_v2 = vld [vmem:[%s993_s10 + $0x38] sm:$0xff]  ;;  %vm441_vm1 = vcmask 261120   ;;  %v931_v3 = vmov 0.0   ;;  %v415_v5 = vld [vmem:[%s993_s10 + $0x20] sm:$0xff]  ;;  %vm932_vm2 = vmmov 0  }
  0x2f   : > { %821 = vmatprep.subr.bf16.mxu0 %v931_v3  ;;  %v422_v4 = vpack.c.bf16 %v418_v2, %v417_v1  ;;  %833 = vmatprep.subr.bf16.mxu1 %v931_v3  ;;  %v416_v6 = vld [vmem:[%s993_s10 + $0x28] sm:$0xff]  ;;  %v429_v7 = vld [vmem:[%s998_s13 + $0x30] sm:$0xff]  ;;  %v430_v9 = vld [vmem:[%s998_s13 + $0x38] sm:$0xff]  ;;  %vm568_vm3 = vcmask 523264   ;;  %v933_v46 = vmov 0  }
  0x30   : > { %829 = vmatprep.mubr.msk.bf16.mxu0 %vm932_vm2, %v931_v3  ;;  %841 = vmatprep.mubr.msk.bf16.mxu1 %vm932_vm2, %v931_v3  ;;  %v434_v10 = vpack.c.bf16 %v430_v9, %v429_v7  ;;  %v421_v11 = vpack.c.bf16 %v416_v6, %v415_v5  ;;  %v427_v12 = vld [vmem:[%s998_s13 + $0x20] sm:$0xff]  ;;  %v428_v13 = vld [vmem:[%s998_s13 + $0x28] sm:$0xff]  ;;  %v413_v17 = vld [vmem:[%s993_s10 + $0x10] sm:$0xff] }
  0x31   : > { %v455_v8 = vsel %vm441_vm1, %v422_v4, 0  ;;  %v433_v15 = vpack.c.bf16 %v428_v13, %v427_v12  ;;  %v414_v18 = vld [vmem:[%s993_s10 + $0x18] sm:$0xff]  ;;  %v425_v21 = vld [vmem:[%s998_s13 + $0x10] sm:$0xff]  ;;  %v411_v25 = vld [vmem:[%s993_s10] sm:$0xff]  ;;  %882 = vset.pattern.permute.xlu0 %v933_v46 }
  0x32   : > { %822 = vmatpush3.bf16.xpose.msra.mxu0 %v455_v8  ;;  %v508_v14 = vsel %vm441_vm1, %v434_v10, 0  ;;  %v452_v16 = vsel %vm441_vm1, %v421_v11, 0  ;;  %v420_v20 = vpack.c.bf16 %v414_v18, %v413_v17  ;;  %v426_v22 = vld [vmem:[%s998_s13 + $0x18] sm:$0xff]  ;;  %v412_v26 = vld [vmem:[%s993_s10 + $0x8] sm:$0xff]  ;;  %v423_v29 = vld [vmem:[%s998_s13] sm:$0xff] }
  0x33   : > { %823 = vmatprep.subr.bf16.mxu0 %v931_v3  ;;  %834 = vmatpush3.bf16.xpose.msra.mxu1 %v508_v14  ;;  %v505_v19 = vsel %vm441_vm1, %v433_v15, 0  ;;  %v432_v23 = vpack.c.bf16 %v426_v22, %v425_v21  ;;  %v419_v28 = vpack.c.bf16 %v412_v26, %v411_v25  ;;  %v424_v30 = vld [vmem:[%s998_s13 + $0x8] sm:$0xff]  ;;  %v408_v33 = vld [vmem:[%s1084_s1] sm:$0xff]  ;;  %v437_v37 = vld [vmem:[%s1003_s16 + $0x10] sm:$0xff] }
  0x34   : > { %835 = vmatprep.subr.bf16.mxu1 %v931_v3  ;;  %v449_v24 = vsel %vm441_vm1, %v420_v20, 0  ;;  %v431_v31 = vpack.c.bf16 %v424_v30, %v423_v29  ;;  %v409_v34 = vld [vmem:[%s1084_s1 + $0x8] sm:$0xff]  ;;  %v438_v38 = vld [vmem:[%s1003_s16 + $0x18] sm:$0xff]  ;;  %v435_v41 = vld [vmem:[%s1003_s16] sm:$0xff] }
  0x35   : > { %v502_v27 = vsel %vm441_vm1, %v432_v23, 0  ;;  %v446_v32 = vsel %vm441_vm1, %v419_v28, 0  ;;  %v410_v36 = vpack.c.bf16 %v409_v34, %v408_v33  ;;  %v440_v39 = vpack.c.bf16 %v438_v38, %v437_v37  ;;  %v436_v42 = vld [vmem:[%s1003_s16 + $0x8] sm:$0xff]  ;;  %v621_v45 = vld [vmem:[%s1008_s20] sm:$0xff] }
  0x36   : > { %v499_v35 = vsel %vm441_vm1, %v431_v31, 0  ;;  %v439_v43 = vpack.c.bf16 %v436_v42, %v435_v41  ;;  %625 = vperm.xlu0 %882, %v621_v45   ;;  %v622_v47 = vld [vmem:[%s1008_s20 + $0x8] sm:$0xff]  ;;  %v619_v7 = vld [vmem:[%s1089_s6] sm:$0xff] }
  0x37   : > { %v576_v40 = vsel %vm568_vm3, %v440_v39, 0  ;;  %v620_v13 = vld [vmem:[%s1089_s6 + $0x8] sm:$0xff] }
  0x38   : > { %v573_v44 = vsel %vm568_vm3, %v439_v43, 0 }
  0x3a   : > { %824 = vmatpush3.bf16.xpose.msra.mxu0 %v452_v16  ;;  %630 = vperm.xlu0 %882, %v622_v47  }
  0x3b   : > { %825 = vmatprep.subr.bf16.mxu0 %v931_v3  ;;  %836 = vmatpush3.bf16.xpose.msra.mxu1 %v505_v19 }
  0x3c   : > { %837 = vmatprep.subr.bf16.mxu1 %v931_v3 }
  0x42   : > { %826 = vmatpush3.bf16.xpose.msra.mxu0 %v449_v24 }
  0x43   : > { %827 = vmatprep.subr.bf16.mxu0 %v931_v3  ;;  %838 = vmatpush3.bf16.xpose.msra.mxu1 %v502_v27 }
  0x44   : > { %839 = vmatprep.subr.bf16.mxu1 %v931_v3 }
  0x4a   : > { %828 = vmatpush3.bf16.xpose.msra.mxu0 %v446_v32 }
  0x4b   : > { %845 = vmatprep.subr.bf16.mxu0 %v931_v3  ;;  %840 = vmatpush3.bf16.xpose.msra.mxu1 %v499_v35 }
  0x51   : > { %830 = vmatmul.mubr.msk.bf16.vlgmr.msra.gmra.mxu0 %vm441_vm1, %v410_v36 }
  0x52   : > { %849 = vmatprep.mubr.msk.bf16.mxu0 %vm932_vm2, %v931_v3  ;;  %842 = vmatmul.mubr.msk.bf16.vlgmr.msra.gmra.mxu1 %vm441_vm1, %v410_v36 }
  0x53   : > { %846 = vmatpush3.bf16.xpose.msra.mxu0 %v576_v40 }
  0x54   : > { %847 = vmatprep.subr.bf16.mxu0 %v931_v3 }
  0x5b   : > { %848 = vmatpush3.bf16.xpose.msra.mxu0 %v573_v44 }
  0xb1   : > { %v626_v5 = vpop.permute.xlu0 %625 }
  0xb5   : > { %v631_v11 = vpop.permute.xlu0 %630 }
 0x111   : > { %v491_v48 = vpop.f32.mrf.mxu0 }
 0x112   : > { %v796_v49 = vmul.f32 -1.442695, %v491_v48  ;;  %v544_v51 = vpop.f32.mrf.mxu1 }
 0x113   : > { %v831_v50 = vpop.f32.mrf.mxu0 }
 0x114   : > { %883 = vpow2.f32 %v796_v49  ;;  %v843_v54 = vpop.f32.mrf.mxu1 }
 0x115   : > { %v494_v52 = vpop.f32.mrf.mxu0 }
 0x116   : > { %v797_v53 = vmul.f32 -1.442695, %v494_v52  ;;  %v547_v56 = vpop.f32.mrf.mxu1 }
 0x117   : > { %v832_v55 = vpop.f32.mrf.mxu0 }
 0x118   : > { %885 = vpow2.f32 %v797_v53  ;;  %v844_v57 = vpop.f32.mrf.mxu1 }
 0x121   : > { %v884_v58 = vpop.eup %883 }
 0x122   : > { %v557_v59 = vadd.f32 1.0, %v884_v58 }
 0x124   : > { %887 = vrcp.f32 %v557_v59 }
 0x125   : > { %v886_v60 = vpop.eup %885 }
 0x126   : > { %v558_v61 = vadd.f32 1.0, %v886_v60 }
 0x128   : > { %889 = vrcp.f32 %v558_v61 }
 0x131   : > { %v888_v62 = vpop.eup %887 }
 0x132   : > { %v563_v63 = vmul.f32 %v888_v62, %v491_v48 }
 0x134   : > { %v565_v2 = vmul.f32 %v563_v63, %v544_v51 }
 0x135   : > { %v890_v0 = vpop.eup %889 }
 0x136   : > { %v564_v1 = vmul.f32 %v890_v0, %v494_v52 }
 0x138   : > { %v566_v3 = vmul.f32 %v564_v1, %v547_v56 }
 0x13a   : > { %v567_v4 = vpack.c.bf16 %v566_v3, %v565_v2 }
 0x13c   : > { %850 = vmatmul.mubr.msk.bf16.vlgmr.msra.gmra.mxu0 %vm568_vm3, %v567_v4 }
 0x1fc   : > { %v612_v6 = vpop.f32.mrf.mxu0 }
 0x1fd   : > { %v633_v8 = vmul.f32 %v626_v5, %v612_v6 }
 0x1fe   : > { %v851_v9 = vpop.f32.mrf.mxu0 }
 0x1ff   : > { %v635_v10 = vadd.f32 %v633_v8, %v619_v7 }
 0x200   : > { %v615_v12 = vpop.f32.mrf.mxu0 }
 0x201   : > { %637 = vst.msk [vmem:[%s1089_s6] sm:$0xff] %vm441_vm1, %v635_v10  ;;  %v634_v14 = vmul.f32 %v631_v11, %v615_v12 }
 0x202   : > { %v852_v15 = vpop.f32.mrf.mxu0 }
 0x203   : > { %v636_v16 = vadd.f32 %v634_v14, %v620_v13 }
 0x205   : > { %638 = vst.msk [vmem:[%s1089_s6 + $0x8] sm:$0xff] %vm441_vm1, %v636_v16 }
 0x206 PF: > { %s22_s28 = sadd.s32 1, %s927_s28   ;;  %s1090_s26 = smov %s923_s27 }
 0x207   : > { %p19_p12 = scmp.ge.s32.totalorder %s22_s28, 10   ;;  %s1091_s27 = smov %s1093_s0 }
 0x209   :  { %21 = sbr.rel (!%p19_p12) target bundleno = 17 (0x11), region = 90 }

</bundles_post_ra>
